<compile_context>
chip_gen: v7x
topology: tpu7x:2x2x1
jax: 0.10.0
libtpu: 0.0.40
codegen_flags: <defaults>
</compile_context>

<pallas_src>
import functools

import jax
import jax.numpy as jnp
from jax import lax
from jax.experimental import pallas as pl
from jax.experimental.pallas import tpu as pltpu
import numpy as np

BN_EPS = 1e-5
LANE = 128      # conv output channels zero-padded to one lane-dense vreg width
TM_MAX = 2048   # rows-per-tile upper bound (~3 MB double-buffered per step)


# ----------------------------- Pallas kernels ------------------------------ #
def _stats_kernel(p_ref, w_ref, stats_ref, *, m_total, tile_m):
    """Pass 1 (stats only): y = patches @ W (bf16 MXU, f32 acc) -> per-tile sum / sumsq."""
    y = jnp.dot(p_ref[...], w_ref[...], preferred_element_type=jnp.float32)

    def write(yv):
        stats_ref[0:1, :] = jnp.sum(yv, axis=0, keepdims=True)
        stats_ref[1:2, :] = jnp.sum(yv * yv, axis=0, keepdims=True)

    if m_total % tile_m != 0:
        num_tiles = pl.cdiv(m_total, tile_m)
        valid_last = m_total - (num_tiles - 1) * tile_m
        is_last = pl.program_id(0) == num_tiles - 1

        @pl.when(is_last)
        def _():
            # Narrow (TM,1) column mask; only the ragged last tile pays for it.
            row = lax.broadcasted_iota(jnp.int32, (tile_m, 1), 0)
            write(jnp.where(row < valid_last, y, 0.0))

        @pl.when(pl.program_id(0) != num_tiles - 1)
        def _():
            write(y)
    else:
        write(y)


def _conv_bn_act_kernel(p_ref, w_ref, scale_ref, shift_ref, o_ref):
    """Pass 2: recompute y on the MXU, then out = relu(y * scale + shift) (bf16 store)."""
    y = jnp.dot(p_ref[...], w_ref[...], preferred_element_type=jnp.float32)
    o_ref[...] = jnp.maximum(y * scale_ref[...] + shift_ref[...], 0.0).astype(o_ref.dtype)


# ------------------------------- JAX glue ---------------------------------- #
def _im2col_3d_ndhwc(x, kernel, stride, padding):
    """x: (N, C, D, H, W) -> patches (N*Do*Ho*Wo, KD*KH*KW*C), feature order (kd, kh, kw, c).

    The channel transpose is done on the *un-expanded* input (NDHWC); the stacked patch
    tensor is built directly in row-major (m, k) order so the final reshape is copy-free.
    """
    N, C, D, H, W = x.shape
    KD, KH, KW = kernel
    SD, SH, SW = stride
    PD, PH, PW = padding
    xc = jnp.transpose(x, (0, 2, 3, 4, 1))                          # NDHWC (pre-expansion)
    xp = jnp.pad(xc, ((0, 0), (PD, PD), (PH, PH), (PW, PW), (0, 0)))
    Do = (D + 2 * PD - KD) // SD + 1
    Ho = (H + 2 * PH - KH) // SH + 1
    Wo = (W + 2 * PW - KW) // SW + 1
    slices = []
    for kd in range(KD):
        for kh in range(KH):
            for kw in range(KW):
                slices.append(xp[
                    :,
                    kd : kd + SD * (Do - 1) + 1 : SD,
                    kh : kh + SH * (Ho - 1) + 1 : SH,
                    kw : kw + SW * (Wo - 1) + 1 : SW,
                    :,
                ])                                                  # (N, Do, Ho, Wo, C)
    p = jnp.stack(slices, axis=4)                                   # (N, Do, Ho, Wo, KK, C)
    return p.reshape(N * Do * Ho * Wo, KD * KH * KW * C), (N, Do, Ho, Wo)


@functools.partial(jax.jit, static_argnames=("kernel", "stride", "padding"))
def conv3d_block(x, weight, bias, gamma, beta,
                 kernel=(3, 5, 5), stride=(1, 2, 2), padding=(1, 2, 2)):
    """Equivalent of Conv3D.forward (conv3d -> BN(train batch stats) -> ReLU), x in NCDHW."""
    del bias  # exactly cancelled by the training-mode BN mean subtraction (dead work)
    Cout, Cin = weight.shape[0], weight.shape[1]
    KD, KH, KW = kernel
    K = Cin * KD * KH * KW

    # bf16 patches feed the MXU; accumulation stays f32 inside the kernels.
    patches, (N, Do, Ho, Wo) = _im2col_3d_ndhwc(
        x.astype(jnp.bfloat16), kernel, stride, padding)
    M = patches.shape[0]

    # Tiny weight reorder to the (kd, kh, kw, c) patch feature order; lane-pad Cout -> 128.
    w2 = jnp.transpose(weight, (2, 3, 4, 1, 0)).reshape(K, Cout).astype(jnp.bfloat16)
    w2 = jnp.pad(w2, ((0, 0), (0, LANE - Cout)))

    # Big tiles for pipelining, but keep >= 2 tiles whenever M allows so the 'parallel'
    # M axis shards across both v7x TensorCores.
    TM = TM_MAX
    while TM > 256 and M <= TM:
        TM //= 2
    num_tiles = pl.cdiv(M, TM)

    # ---- pass 1: per-tile channel statistics (stats-only, no y written to HBM) ----
    stats = pl.pallas_call(
        functools.partial(_stats_kernel, m_total=M, tile_m=TM),
        out_shape=jax.ShapeDtypeStruct((2, num_tiles * LANE), jnp.float32),
        grid=(num_tiles,),
        in_specs=[
            pl.BlockSpec((TM, K), lambda i: (i, 0)),      # patches tile (K = full last dim)
            pl.BlockSpec((K, LANE), lambda i: (0, 0)),    # weight, resident across the grid
        ],
        out_specs=pl.BlockSpec((2, LANE), lambda i: (0, i)),
        compiler_params=pltpu.CompilerParams(dimension_semantics=("parallel",)),
    )(patches, w2)

    # ---- wrapper: reduce partial stats -> fold BN into per-channel scale/shift ----
    stats = stats.reshape(2, num_tiles, LANE)
    s1 = jnp.sum(stats[0], axis=0)
    s2 = jnp.sum(stats[1], axis=0)
    mean = s1 / M
    var = jnp.maximum(s2 / M - mean * mean, 0.0)   # biased variance (train-mode BN), f32
    inv_std = lax.rsqrt(var + BN_EPS)
    gamma_p = jnp.pad(gamma.astype(jnp.float32), (0, LANE - Cout))
    beta_p = jnp.pad(beta.astype(jnp.float32), (0, LANE - Cout))
    scale = (gamma_p * inv_std).reshape(1, LANE)
    shift = (beta_p - mean * gamma_p * inv_std).reshape(1, LANE)

    # ---- pass 2: recompute conv on the MXU + normalize + ReLU (bf16 lane-dense stores) ----
    out_flat = pl.pallas_call(
        _conv_bn_act_kernel,
        out_shape=jax.ShapeDtypeStruct((M, LANE), jnp.bfloat16),
        grid=(num_tiles,),
        in_specs=[
            pl.BlockSpec((TM, K), lambda i: (i, 0)),
            pl.BlockSpec((K, LANE), lambda i: (0, 0)),
            pl.BlockSpec((1, LANE), lambda i: (0, 0)),
            pl.BlockSpec((1, LANE), lambda i: (0, 0)),
        ],
        out_specs=pl.BlockSpec((TM, LANE), lambda i: (i, 0)),
        compiler_params=pltpu.CompilerParams(dimension_semantics=("parallel",)),
    )(patches, w2, scale, shift)

    # (M, 128) bf16 -> slice Cout -> (N, Do, Ho, Wo, Cout) -> NCDHW f32 (module contract).
    out = out_flat[:, :Cout].reshape(N, Do, Ho, Wo, Cout)
    return jnp.transpose(out, (0, 4, 1, 2, 3)).astype(jnp.float32)


# ------------------------ pure-JAX reference check ------------------------- #
def _reference(x, weight, bias, gamma, beta, kernel, stride, padding):
    y = lax.conv_general_dilated(
        x.astype(jnp.float32), weight.astype(jnp.float32),
        window_strides=stride,
        padding=[(p, p) for p in padding],
        dimension_numbers=("NCDHW", "OIDHW", "NCDHW"),
    )
    y = y + bias.reshape(1, -1, 1, 1, 1)
    mean = jnp.mean(y, axis=(0, 2, 3, 4), keepdims=True)
    var = jnp.mean((y - mean) ** 2, axis=(0, 2, 3, 4), keepdims=True)
    y = (y - mean) * lax.rsqrt(var + BN_EPS)
    y = y * gamma.reshape(1, -1, 1, 1, 1) + beta.reshape(1, -1, 1, 1, 1)
    return jnp.maximum(y, 0.0)


if __name__ == "__main__":
    # Module defaults: in_channels=1, out_channels=24, kernel=(3,5,5),
    # stride=(1,2,2), padding=(1,2,2), loss_type='relu', if_maxpool=False.
    N, Cin, D, H, W = 2, 1, 8, 16, 16
    Cout, KER, STR, PAD = 24, (3, 5, 5), (1, 2, 2), (1, 2, 2)

    key = jax.random.PRNGKey(0)
    kx, kw, kb, kg, kbe = jax.random.split(key, 5)

    x = jax.random.normal(kx, (N, Cin, D, H, W), dtype=jnp.float32)
    fan_in = Cin * KER[0] * KER[1] * KER[2]
    bound = 1.0 / np.sqrt(fan_in)
    weight = jax.random.uniform(kw, (Cout, Cin, *KER), jnp.float32, -bound, bound)
    bias = jax.random.uniform(kb, (Cout,), jnp.float32, -bound, bound)
    gamma = 1.0 + 0.1 * jax.random.normal(kg, (Cout,), jnp.float32)
    beta = 0.1 * jax.random.normal(kbe, (Cout,), jnp.float32)

    out = conv3d_block(x, weight, bias, gamma, beta,
                       kernel=KER, stride=STR, padding=PAD)
    out = jax.block_until_ready(out)

    ref = _reference(x, weight, bias, gamma, beta, KER, STR, PAD)
    assert out.shape == ref.shape, (out.shape, ref.shape)
    np.testing.assert_allclose(np.asarray(out), np.asarray(ref), atol=5e-2, rtol=5e-2)

    print("KERNEL_OK")
</pallas_src>

<mosaic_0001>
module attributes {stable_mosaic.version = 11 : i64} {
  func.func @_stats_kernel(%arg0: i32, %arg1: memref<512x75xbf16, #tpu.memory_space<vmem>>, %arg2: memref<75x128xbf16, #tpu.memory_space<vmem>>, %arg3: memref<2x128xf32, #tpu.memory_space<vmem>>) attributes {dimension_semantics = [#tpu.dimension_semantics<parallel>], iteration_bounds = array<i64: 2>, scalar_prefetch = 0 : i64, scratch_operands = 0 : i64, tpu.core_type = #tpu.core_type<tc>, window_params = [{transform_indices = @transform_0, window_bounds = array<i64: 512, 75>}, {pipeline_mode = #tpu.pipeline_mode<synchronous>, transform_indices = @transform_1, window_bounds = array<i64: 75, 128>}, {transform_indices = @transform_2, window_bounds = array<i64: 2, 128>}]} {
    %c0 = arith.constant 0 : index
    %c0_0 = arith.constant 0 : index
    %0 = vector.load %arg1[%c0, %c0_0] : memref<512x75xbf16, #tpu.memory_space<vmem>>, vector<512x75xbf16>
    %c0_1 = arith.constant 0 : index
    %c0_2 = arith.constant 0 : index
    %1 = vector.load %arg2[%c0_1, %c0_2] : memref<75x128xbf16, #tpu.memory_space<vmem>>, vector<75x128xbf16>
    %cst = arith.constant dense<0.000000e+00> : vector<512x128xf32>
    %2 = tpu.matmul %0, %1, %cst {dimension_numbers = #tpu.dot_dimension_numbers<[1], [0], [0], [1], [0, 0, 1, 1], [], []>} : vector<512x75xbf16>, vector<75x128xbf16>, vector<512x128xf32> -> vector<512x128xf32>
    %cst_3 = arith.constant dense<0.000000e+00> : vector<128xf32>
    %3 = vector.multi_reduction <add>, %2, %cst_3 [0] : vector<512x128xf32> to vector<128xf32>
    %4 = vector.shape_cast %3 : vector<128xf32> to vector<1x128xf32>
    %c0_4 = arith.constant 0 : index
    %c0_5 = arith.constant 0 : index
    %5 = vector.load %arg3[%c0_4, %c0_5] : memref<2x128xf32, #tpu.memory_space<vmem>>, vector<1x128xf32>
    tpu.vector_store %arg3[%c0_4, %c0_5], %4 {strides = array<i32>} : memref<2x128xf32, #tpu.memory_space<vmem>>, vector<1x128xf32>,
    %6 = arith.mulf %2, %2 : vector<512x128xf32>
    %cst_6 = arith.constant dense<0.000000e+00> : vector<128xf32>
    %7 = vector.multi_reduction <add>, %6, %cst_6 [0] : vector<512x128xf32> to vector<128xf32>
    %8 = vector.shape_cast %7 : vector<128xf32> to vector<1x128xf32>
    %c1 = arith.constant 1 : index
    %c0_7 = arith.constant 0 : index
    %9 = vector.load %arg3[%c1, %c0_7] : memref<2x128xf32, #tpu.memory_space<vmem>>, vector<1x128xf32>
    tpu.vector_store %arg3[%c1, %c0_7], %8 {strides = array<i32>} : memref<2x128xf32, #tpu.memory_space<vmem>>, vector<1x128xf32>,
    return
  }
  func.func @transform_0(%arg0: i32) -> (i32, i32) {
    %c0_i32 = arith.constant 0 : i32
    %c0_i32_0 = arith.constant 0 : i32
    return %arg0, %c0_i32 : i32, i32
  }
  func.func @transform_1(%arg0: i32) -> (i32, i32) {
    %c0_i32 = arith.constant 0 : i32
    %c0_i32_0 = arith.constant 0 : i32
    %c0_i32_1 = arith.constant 0 : i32
    return %c0_i32, %c0_i32_0 : i32, i32
  }
  func.func @transform_2(%arg0: i32) -> (i32, i32) {
    %c0_i32 = arith.constant 0 : i32
    %c0_i32_0 = arith.constant 0 : i32
    return %c0_i32, %arg0 : i32, i32
  }
}

module attributes {stable_mosaic.version = 11 : i64} {
  func.func @_conv_bn_act_kernel(%arg0: i32, %arg1: memref<512x75xbf16, #tpu.memory_space<vmem>>, %arg2: memref<75x128xbf16, #tpu.memory_space<vmem>>, %arg3: memref<1x128xf32, #tpu.memory_space<vmem>>, %arg4: memref<1x128xf32, #tpu.memory_space<vmem>>, %arg5: memref<512x128xbf16, #tpu.memory_space<vmem>>) attributes {dimension_semantics = [#tpu.dimension_semantics<parallel>], iteration_bounds = array<i64: 2>, scalar_prefetch = 0 : i64, scratch_operands = 0 : i64, tpu.core_type = #tpu.core_type<tc>, window_params = [{transform_indices = @transform_0, window_bounds = array<i64: 512, 75>}, {pipeline_mode = #tpu.pipeline_mode<synchronous>, transform_indices = @transform_1, window_bounds = array<i64: 75, 128>}, {pipeline_mode = #tpu.pipeline_mode<synchronous>, transform_indices = @transform_2, window_bounds = array<i64: 1, 128>}, {pipeline_mode = #tpu.pipeline_mode<synchronous>, transform_indices = @transform_3, window_bounds = array<i64: 1, 128>}, {transform_indices = @transform_4, window_bounds = array<i64: 512, 128>}]} {
    %c0 = arith.constant 0 : index
    %c0_0 = arith.constant 0 : index
    %0 = vector.load %arg1[%c0, %c0_0] : memref<512x75xbf16, #tpu.memory_space<vmem>>, vector<512x75xbf16>
    %c0_1 = arith.constant 0 : index
    %c0_2 = arith.constant 0 : index
    %1 = vector.load %arg2[%c0_1, %c0_2] : memref<75x128xbf16, #tpu.memory_space<vmem>>, vector<75x128xbf16>
    %cst = arith.constant dense<0.000000e+00> : vector<512x128xf32>
    %2 = tpu.matmul %0, %1, %cst {dimension_numbers = #tpu.dot_dimension_numbers<[1], [0], [0], [1], [0, 0, 1, 1], [], []>} : vector<512x75xbf16>, vector<75x128xbf16>, vector<512x128xf32> -> vector<512x128xf32>
    %c0_3 = arith.constant 0 : index
    %c0_4 = arith.constant 0 : index
    %3 = vector.load %arg3[%c0_3, %c0_4] : memref<1x128xf32, #tpu.memory_space<vmem>>, vector<1x128xf32>
    %4 = vector.broadcast %3 : vector<1x128xf32> to vector<512x128xf32>
    %5 = arith.mulf %2, %4 : vector<512x128xf32>
    %c0_5 = arith.constant 0 : index
    %c0_6 = arith.constant 0 : index
    %6 = vector.load %arg4[%c0_5, %c0_6] : memref<1x128xf32, #tpu.memory_space<vmem>>, vector<1x128xf32>
    %7 = vector.broadcast %6 : vector<1x128xf32> to vector<512x128xf32>
    %8 = arith.addf %5, %7 : vector<512x128xf32>
    %cst_7 = arith.constant 0.000000e+00 : f32
    %9 = vector.broadcast %cst_7 : f32 to vector<512x128xf32>
    %10 = arith.maximumf %8, %9 : vector<512x128xf32>
    %11 = arith.truncf %10 : vector<512x128xf32> to vector<512x128xbf16>
    %c0_8 = arith.constant 0 : index
    %c0_9 = arith.constant 0 : index
    %12 = vector.load %arg5[%c0_8, %c0_9] : memref<512x128xbf16, #tpu.memory_space<vmem>>, vector<512x128xbf16>
    tpu.vector_store %arg5[%c0_8, %c0_9], %11 {strides = array<i32>} : memref<512x128xbf16, #tpu.memory_space<vmem>>, vector<512x128xbf16>,
    return
  }
  func.func @transform_0(%arg0: i32) -> (i32, i32) {
    %c0_i32 = arith.constant 0 : i32
    %c0_i32_0 = arith.constant 0 : i32
    return %arg0, %c0_i32 : i32, i32
  }
  func.func @transform_1(%arg0: i32) -> (i32, i32) {
    %c0_i32 = arith.constant 0 : i32
    %c0_i32_0 = arith.constant 0 : i32
    %c0_i32_1 = arith.constant 0 : i32
    return %c0_i32, %c0_i32_0 : i32, i32
  }
  func.func @transform_2(%arg0: i32) -> (i32, i32) {
    %c0_i32 = arith.constant 0 : i32
    %c0_i32_0 = arith.constant 0 : i32
    %c0_i32_1 = arith.constant 0 : i32
    return %c0_i32, %c0_i32_0 : i32, i32
  }
  func.func @transform_3(%arg0: i32) -> (i32, i32) {
    %c0_i32 = arith.constant 0 : i32
    %c0_i32_0 = arith.constant 0 : i32
    %c0_i32_1 = arith.constant 0 : i32
    return %c0_i32, %c0_i32_0 : i32, i32
  }
  func.func @transform_4(%arg0: i32) -> (i32, i32) {
    %c0_i32 = arith.constant 0 : i32
    %c0_i32_0 = arith.constant 0 : i32
    return %arg0, %c0_i32 : i32, i32
  }
}

</mosaic_0001>

<bundles_post_ra>
// kernel: conv3d_block.2
= control target key start
LH: loop header
LB: loop body
LE: loop exit
PB: predicated region body
PF: predicated region fallthrough
CT: control target
= control target key end

     0   :  { %s1328_s9 = smov 0   ;;  %s1591_s0 = inlined_call_operand.vmem [shape: bf16[1024,75], index: 0, kind: input, shape index: {}]   ;;  %s1592_s1 = inlined_call_operand.vmem [shape: bf16[75,128], index: 1, kind: input, shape index: {}]   ;;  %s1593_s2 = inlined_call_operand.vmem [shape: f32[2,256], index: 2, kind: output, shape index: {}]  }
   0x1 LB: > { %s1334_s10 = sadd.s32 4294967295, %s1310_s9   ;;  %p1062_p0 = scmp.ge.s32.totalorder %s1310_s9, 1  ;;  %s1310_s9 = sphi %s1328_s9, %s12_s9  }
   0x2   : > { %p113_p1 = scmp.lt.s32.totalorder %s1310_s9, 3 }
   0x4   : > { %p114_p2 = pnand %p1062_p0, %p113_p1 }
   0x5   : > { %v1267_v0 = vld [vmem:[%s1592_s1] sm:$0xff] (!%p114_p2)   ;;  %v1268_v1 = vld [vmem:[%s1592_s1 + $0x8] sm:$0xff] (!%p114_p2)   ;;  %vm505_vm0 = vcmask (!%p114_p2), 1044480   ;;  %v1269_v2 = vld [vmem:[%s1592_s1 + $0x10] sm:$0xff] (!%p114_p2)   ;;  %s1063_s17 = sshll.u32 (!%p114_p2), %s1334_s10, 6  ;;  %vm506_vm1 = vcmask (!%p114_p2), 1045504  }
   0x6   : > { %117 = sbr.rel (%p114_p2) target bundleno = 382 (0x17e), region = 28  ;;  %1174 = vmatprep.subr.bf16.mxu0 (!%p114_p2), %v1267_v0  ;;  %1248 = vmatprep.subr.bf16.mxu1 (!%p114_p2), %v1267_v0  ;;  %v1312_v3 = vmov (!%p114_p2), 65535   ;;  %p135_p3 = scmp.lt.s32.totalorder (!%p114_p2), %s1063_s17, 127  ;;  %v1270_v5 = vld [vmem:[%s1592_s1 + $0x18] sm:$0xff] (!%p114_p2)   ;;  %v1271_v6 = vld [vmem:[%s1592_s1 + $0x20] sm:$0x3f] (!%p114_p2)  }
   0x7   : > { %1175 = vmatpush3.bf16.msra.mxu0 (!%p114_p2), %v1267_v0  ;;  %1253 = vmatpush3.bf16.msra.mxu1 (!%p114_p2), %v1267_v0  ;;  %v507_v4 = vsel (!%p114_p2), %vm505_vm0, 4294967295, %v1312_v3  ;;  %vm408_vm2 = vcmask (!%p114_p2), 613376   ;;  %p140_p4 = scmp.lt.s32.totalorder (!%p114_p2), %s1334_s10, 1 }
   0x8   : > { %1176 = vmatprep.subr.bf16.mxu0 (!%p114_p2), %v1268_v1  ;;  %1249 = vmatprep.subr.bf16.mxu1 (!%p114_p2), %v1268_v1  ;;  %v508_v7 = vsel (!%p114_p2), %vm506_vm1, %v507_v4, 0 }
   0x9   : > { %v510_v8 = vand.u32 (!%p114_p2), %v1271_v6, %v508_v7 }
   0xb   : > { %1177 = vmatpush3.bf16.msra.mxu0 (!%p114_p2), %v1268_v1  ;;  %1254 = vmatpush3.bf16.msra.mxu1 (!%p114_p2), %v1268_v1 }
   0xc   : > { %1178 = vmatprep.subr.bf16.mxu0 (!%p114_p2), %v1269_v2  ;;  %1250 = vmatprep.subr.bf16.mxu1 (!%p114_p2), %v1269_v2 }
   0xd   : > { %s1595_s17 = smov (!%p135_p3, %s1063_s17), 127  ;;  %s1597_s10 = smov (!%p140_p4, %s1334_s10), 1 }
   0xe   : > { %s1064_s22 = sshll.u32 %s1595_s17, 2  ;;  %s1065_s26 = sshll.u32 %s1597_s10, 1 }
   0xf   : > { %1179 = vmatpush3.bf16.msra.mxu0 %v1269_v2  ;;  %s1357_s25 = scalar_lea.vmem %s1591_s0, %s1064_s22  ;;  %1255 = vmatpush3.bf16.msra.mxu1 %v1269_v2  ;;  %s143_s29 = scalar_lea.vmem %s1593_s2, %s1065_s26 }
  0x10   : > { %1180 = vmatprep.subr.bf16.mxu0 %v1270_v5  ;;  %v1272_v9 = vld [vmem:[%s1357_s25] sm:$0xff]   ;;  %1251 = vmatprep.subr.bf16.mxu1 %v1270_v5  ;;  %v1273_v10 = vld [vmem:[%s1357_s25 + $0x8] sm:$0xff]   ;;  %v1274_v11 = vld [vmem:[%s1357_s25 + $0x10] sm:$0xff]  }
  0x11   : > { %1184 = vmatprep.mubr.msk.bf16.mxu0 %vm408_vm2, %v1272_v9  ;;  %v1275_v12 = vld [vmem:[%s1357_s25 + $0x18] sm:$0xff]   ;;  %v1276_v13 = vld [vmem:[%s1357_s25 + $0x20] sm:$0xff]   ;;  %v1289_v15 = vld [vmem:[%s1357_s25 + $0x88] sm:$0xff]  }
  0x12   : > { %v1288_v14 = vld [vmem:[%s1357_s25 + $0x80] sm:$0xff]   ;;  %v1290_v16 = vld [vmem:[%s1357_s25 + $0x90] sm:$0xff]   ;;  %v1277_v17 = vld [vmem:[%s1357_s25 + $0x28] sm:$0xff]  }
  0x13   : > { %1181 = vmatpush3.bf16.msra.mxu0 %v1270_v5  ;;  %1256 = vmatpush3.bf16.msra.mxu1 %v1270_v5  ;;  %v1278_v18 = vld [vmem:[%s1357_s25 + $0x30] sm:$0xff]   ;;  %v1291_v19 = vld [vmem:[%s1357_s25 + $0x98] sm:$0xff]   ;;  %v1292_v20 = vld [vmem:[%s1357_s25 + $0xa0] sm:$0xff]  }
  0x14   : > { %1182 = vmatprep.subr.bf16.mxu0 %v510_v8  ;;  %1252 = vmatprep.subr.bf16.mxu1 %v510_v8  ;;  %v1279_v21 = vld [vmem:[%s1357_s25 + $0x38] sm:$0xff]   ;;  %v1280_v22 = vld [vmem:[%s1357_s25 + $0x40] sm:$0xff]   ;;  %v1293_v23 = vld [vmem:[%s1357_s25 + $0xa8] sm:$0xff]  }
  0x15   : > { %1216 = vmatprep.mubr.msk.bf16.mxu1 %vm408_vm2, %v1288_v14  ;;  %v1294_v24 = vld [vmem:[%s1357_s25 + $0xb0] sm:$0xff]   ;;  %v1281_v25 = vld [vmem:[%s1357_s25 + $0x48] sm:$0xff]   ;;  %v1295_v27 = vld [vmem:[%s1357_s25 + $0xb8] sm:$0xff]  }
  0x16   : > { %v1282_v26 = vld [vmem:[%s1357_s25 + $0x50] sm:$0xff]   ;;  %v1296_v28 = vld [vmem:[%s1357_s25 + $0xc0] sm:$0xff]   ;;  %v1283_v29 = vld [vmem:[%s1357_s25 + $0x58] sm:$0xff]  }
  0x17   : > { %1183 = vmatpush3.bf16.msra.mxu0 %v510_v8  ;;  %1257 = vmatpush3.bf16.msra.mxu1 %v510_v8  ;;  %v1284_v30 = vld [vmem:[%s1357_s25 + $0x60] sm:$0xff]   ;;  %v1297_v31 = vld [vmem:[%s1357_s25 + $0xc8] sm:$0xff]   ;;  %v1298_v32 = vld [vmem:[%s1357_s25 + $0xd0] sm:$0xff]  }
  0x18   : > { %v1285_v33 = vld [vmem:[%s1357_s25 + $0x68] sm:$0xff]   ;;  %v1286_v34 = vld [vmem:[%s1357_s25 + $0x70] sm:$0xff]   ;;  %v1299_v35 = vld [vmem:[%s1357_s25 + $0xd8] sm:$0xff]  }
  0x19   : > { %v1300_v36 = vld [vmem:[%s1357_s25 + $0xe0] sm:$0xff]   ;;  %v1287_v37 = vld [vmem:[%s1357_s25 + $0x78] sm:$0xff]   ;;  %v1301_v38 = vld [vmem:[%s1357_s25 + $0xe8] sm:$0xff]  }
  0x1a   : > { %1185 = vmatmul.mubr.msk.bf16.vlgmr.msra.gmra.mrb[0].mxu0 %vm408_vm2, %v1273_v10  ;;  %1217 = vmatmul.mubr.msk.bf16.vlgmr.msra.gmra.mrb[0].mxu1 %vm408_vm2, %v1289_v15  ;;  %v1302_v39 = vld [vmem:[%s1357_s25 + $0xf0] sm:$0xff]   ;;  %v1303_v40 = vld [vmem:[%s1357_s25 + $0xf8] sm:$0xff]  }
  0x1b   : > { %1188 = vmatprep.mubr.msk.bf16.mxu0 %vm408_vm2, %v1274_v11  ;;  %1220 = vmatprep.mubr.msk.bf16.mxu1 %vm408_vm2, %v1290_v16 }
  0x22   : > { %1189 = vmatmul.mubr.msk.bf16.gmra.mrb[4].mxu0 %vm408_vm2, %v1275_v12  ;;  %1221 = vmatmul.mubr.msk.bf16.gmra.mrb[4].mxu1 %vm408_vm2, %v1291_v19 }
  0x23   : > { %1192 = vmatprep.mubr.msk.bf16.mxu0 %vm408_vm2, %v1276_v13  ;;  %1224 = vmatprep.mubr.msk.bf16.mxu1 %vm408_vm2, %v1292_v20 }
  0x2a   : > { %1193 = vmatmul.mubr.msk.bf16.gmra.mrb[8].mxu0 %vm408_vm2, %v1277_v17  ;;  %1225 = vmatmul.mubr.msk.bf16.gmra.mrb[8].mxu1 %vm408_vm2, %v1293_v23 }
  0x2b   : > { %1196 = vmatprep.mubr.msk.bf16.mxu0 %vm408_vm2, %v1278_v18  ;;  %1228 = vmatprep.mubr.msk.bf16.mxu1 %vm408_vm2, %v1294_v24 }
  0x32   : > { %1197 = vmatmul.mubr.msk.bf16.gmra.mrb[12].mxu0 %vm408_vm2, %v1279_v21  ;;  %1229 = vmatmul.mubr.msk.bf16.gmra.mrb[12].mxu1 %vm408_vm2, %v1295_v27 }
  0x33   : > { %1200 = vmatprep.mubr.msk.bf16.mxu0 %vm408_vm2, %v1280_v22  ;;  %1232 = vmatprep.mubr.msk.bf16.mxu1 %vm408_vm2, %v1296_v28 }
  0x3a   : > { %1201 = vmatmul.mubr.msk.bf16.gmra.mrb[16].mxu0 %vm408_vm2, %v1281_v25  ;;  %1233 = vmatmul.mubr.msk.bf16.gmra.mrb[16].mxu1 %vm408_vm2, %v1297_v31 }
  0x3b   : > { %1204 = vmatprep.mubr.msk.bf16.mxu0 %vm408_vm2, %v1282_v26  ;;  %1236 = vmatprep.mubr.msk.bf16.mxu1 %vm408_vm2, %v1298_v32 }
  0x42   : > { %1205 = vmatmul.mubr.msk.bf16.gmra.mrb[20].mxu0 %vm408_vm2, %v1283_v29  ;;  %1237 = vmatmul.mubr.msk.bf16.gmra.mrb[20].mxu1 %vm408_vm2, %v1299_v35 }
  0x43   : > { %1208 = vmatprep.mubr.msk.bf16.mxu0 %vm408_vm2, %v1284_v30  ;;  %1240 = vmatprep.mubr.msk.bf16.mxu1 %vm408_vm2, %v1300_v36 }
  0x4a   : > { %1209 = vmatmul.mubr.msk.bf16.gmra.mrb[24].mxu0 %vm408_vm2, %v1285_v33  ;;  %1241 = vmatmul.mubr.msk.bf16.gmra.mrb[24].mxu1 %vm408_vm2, %v1301_v38 }
  0x4b   : > { %1212 = vmatprep.mubr.msk.bf16.mxu0 %vm408_vm2, %v1286_v34  ;;  %1244 = vmatprep.mubr.msk.bf16.mxu1 %vm408_vm2, %v1302_v39 }
  0x52   : > { %1213 = vmatmul.mubr.msk.bf16.gmra.mrb[28].mxu0 %vm408_vm2, %v1287_v37  ;;  %1245 = vmatmul.mubr.msk.bf16.gmra.mrb[28].mxu1 %vm408_vm2, %v1303_v40 }
  0xed   : > { %v1186_v41 = vpop.f32.mrb[0].mxu0  ;;  %v1423_v56 = vpop.f32.mrb[0].mxu1 }
  0xee   : > { %v546_v42 = vpop.f32.mrb[1].mxu0  ;;  %v873_v48 = vmul.f32 %v1186_v41, %v1186_v41  ;;  %v1425_v61 = vpop.f32.mrb[1].mxu1 }
  0xef   : > { %v1187_v43 = vpop.f32.mrb[2].mxu0  ;;  %v871_v45 = vmul.f32 %v546_v42, %v546_v42  ;;  %v1427_v63 = vpop.f32.mrb[2].mxu1 }
  0xf0   : > { %v549_v44 = vpop.f32.mrb[3].mxu0  ;;  %v874_v51 = vmul.f32 %v1187_v43, %v1187_v43  ;;  %v1429_v3 = vpop.f32.mrb[3].mxu1 }
  0xf1   : > { %v801_v46 = vadd.f32 %v549_v44, %v546_v42  ;;  %v872_v47 = vmul.f32 %v549_v44, %v549_v44 }
  0xf3   : > { %v802_v49 = vadd.f32 %v1186_v41, %v801_v46  ;;  %v935_v50 = vadd.f32 %v872_v47, %v871_v45 }
  0xf5   : > { %v936_v52 = vadd.f32 %v935_v50, %v873_v48  ;;  %v1190_v53 = vpop.f32.mrb[4].mxu0  ;;  %v803_v54 = vadd.f32 %v1187_v43, %v802_v49  ;;  %v1431_v12 = vpop.f32.mrb[4].mxu1 }
  0xf6   : > { %v562_v55 = vpop.f32.mrb[5].mxu0  ;;  %v877_v4 = vmul.f32 %v1190_v53, %v1190_v53  ;;  %v1433_v17 = vpop.f32.mrb[5].mxu1 }
  0xf7   : > { %v804_v57 = vadd.f32 %v803_v54, %v562_v55  ;;  %v875_v58 = vmul.f32 %v562_v55, %v562_v55  ;;  %v937_v59 = vadd.f32 %v936_v52, %v874_v51  ;;  %v1191_v60 = vpop.f32.mrb[6].mxu0  ;;  %v1435_v19 = vpop.f32.mrb[6].mxu1 }
  0xf8   : > { %v565_v62 = vpop.f32.mrb[7].mxu0  ;;  %v878_v7 = vmul.f32 %v1191_v60, %v1191_v60  ;;  %v1437_v23 = vpop.f32.mrb[7].mxu1 }
  0xf9   : > { %v938_v0 = vadd.f32 %v937_v59, %v875_v58  ;;  %v805_v1 = vadd.f32 %v804_v57, %v565_v62  ;;  %v876_v2 = vmul.f32 %v565_v62, %v565_v62 }
  0xfb   : > { %v806_v5 = vadd.f32 %v1190_v53, %v805_v1  ;;  %v939_v6 = vadd.f32 %v938_v0, %v876_v2 }
  0xfd   : > { %v940_v8 = vadd.f32 %v939_v6, %v877_v4  ;;  %v1194_v9 = vpop.f32.mrb[8].mxu0  ;;  %v807_v10 = vadd.f32 %v1191_v60, %v806_v5  ;;  %v1439_v32 = vpop.f32.mrb[8].mxu1 }
  0xfe   : > { %v578_v11 = vpop.f32.mrb[9].mxu0  ;;  %v881_v24 = vmul.f32 %v1194_v9, %v1194_v9  ;;  %v1441_v37 = vpop.f32.mrb[9].mxu1 }
  0xff   : > { %v808_v13 = vadd.f32 %v807_v10, %v578_v11  ;;  %v879_v14 = vmul.f32 %v578_v11, %v578_v11  ;;  %v941_v15 = vadd.f32 %v940_v8, %v878_v7  ;;  %v1195_v16 = vpop.f32.mrb[10].mxu0  ;;  %v1443_v39 = vpop.f32.mrb[10].mxu1 }
 0x100   : > { %v581_v18 = vpop.f32.mrb[11].mxu0  ;;  %v882_v27 = vmul.f32 %v1195_v16, %v1195_v16  ;;  %v1445_v43 = vpop.f32.mrb[11].mxu1 }
 0x101   : > { %v942_v20 = vadd.f32 %v941_v15, %v879_v14  ;;  %v809_v21 = vadd.f32 %v808_v13, %v581_v18  ;;  %v880_v22 = vmul.f32 %v581_v18, %v581_v18 }
 0x103   : > { %v810_v25 = vadd.f32 %v1194_v9, %v809_v21  ;;  %v943_v26 = vadd.f32 %v942_v20, %v880_v22 }
 0x105   : > { %v944_v28 = vadd.f32 %v943_v26, %v881_v24  ;;  %v1198_v29 = vpop.f32.mrb[12].mxu0  ;;  %v811_v30 = vadd.f32 %v1195_v16, %v810_v25  ;;  %v1447_v52 = vpop.f32.mrb[12].mxu1 }
 0x106   : > { %v594_v31 = vpop.f32.mrb[13].mxu0  ;;  %v885_v44 = vmul.f32 %v1198_v29, %v1198_v29  ;;  %v1449_v58 = vpop.f32.mrb[13].mxu1 }
 0x107   : > { %v812_v33 = vadd.f32 %v811_v30, %v594_v31  ;;  %v883_v34 = vmul.f32 %v594_v31, %v594_v31  ;;  %v945_v35 = vadd.f32 %v944_v28, %v882_v27  ;;  %v1199_v36 = vpop.f32.mrb[14].mxu0  ;;  %v1451_v60 = vpop.f32.mrb[14].mxu1 }
 0x108   : > { %v597_v38 = vpop.f32.mrb[15].mxu0  ;;  %v886_v47 = vmul.f32 %v1199_v36, %v1199_v36  ;;  %v1453_v2 = vpop.f32.mrb[15].mxu1 }
 0x109   : > { %v946_v40 = vadd.f32 %v945_v35, %v883_v34  ;;  %v813_v41 = vadd.f32 %v812_v33, %v597_v38  ;;  %v884_v42 = vmul.f32 %v597_v38, %v597_v38 }
 0x10b   : > { %v814_v45 = vadd.f32 %v1198_v29, %v813_v41  ;;  %v947_v46 = vadd.f32 %v946_v40, %v884_v42 }
 0x10d   : > { %v948_v48 = vadd.f32 %v947_v46, %v885_v44  ;;  %v1202_v49 = vpop.f32.mrb[16].mxu0  ;;  %v815_v50 = vadd.f32 %v1199_v36, %v814_v45  ;;  %v1455_v13 = vpop.f32.mrb[16].mxu1 }
 0x10e   : > { %v610_v51 = vpop.f32.mrb[17].mxu0  ;;  %v889_v4 = vmul.f32 %v1202_v49, %v1202_v49  ;;  %v1457_v20 = vpop.f32.mrb[17].mxu1 }
 0x10f   : > { %v816_v53 = vadd.f32 %v815_v50, %v610_v51  ;;  %v887_v54 = vmul.f32 %v610_v51, %v610_v51  ;;  %v949_v55 = vadd.f32 %v948_v48, %v886_v47  ;;  %v1203_v57 = vpop.f32.mrb[18].mxu0  ;;  %v1459_v22 = vpop.f32.mrb[18].mxu1 }
 0x110   : > { %v613_v59 = vpop.f32.mrb[19].mxu0  ;;  %v890_v7 = vmul.f32 %v1203_v57, %v1203_v57  ;;  %v1461_v27 = vpop.f32.mrb[19].mxu1 }
 0x111   : > { %v950_v62 = vadd.f32 %v949_v55, %v887_v54  ;;  %v817_v0 = vadd.f32 %v816_v53, %v613_v59  ;;  %v888_v1 = vmul.f32 %v613_v59, %v613_v59 }
 0x113   : > { %v818_v5 = vadd.f32 %v1202_v49, %v817_v0  ;;  %v951_v6 = vadd.f32 %v950_v62, %v888_v1 }
 0x115   : > { %v952_v8 = vadd.f32 %v951_v6, %v889_v4  ;;  %v1206_v9 = vpop.f32.mrb[20].mxu0  ;;  %v819_v10 = vadd.f32 %v1203_v57, %v818_v5  ;;  %v1463_v38 = vpop.f32.mrb[20].mxu1 }
 0x116   : > { %v626_v11 = vpop.f32.mrb[21].mxu0  ;;  %v893_v28 = vmul.f32 %v1206_v9, %v1206_v9  ;;  %v1465_v45 = vpop.f32.mrb[21].mxu1 }
 0x117   : > { %v820_v14 = vadd.f32 %v819_v10, %v626_v11  ;;  %v891_v15 = vmul.f32 %v626_v11, %v626_v11  ;;  %v953_v16 = vadd.f32 %v952_v8, %v890_v7  ;;  %v1207_v18 = vpop.f32.mrb[22].mxu0  ;;  %v1467_v47 = vpop.f32.mrb[22].mxu1 }
 0x118   : > { %v629_v21 = vpop.f32.mrb[23].mxu0  ;;  %v894_v31 = vmul.f32 %v1207_v18, %v1207_v18  ;;  %v1469_v51 = vpop.f32.mrb[23].mxu1 }
 0x119   : > { %v954_v24 = vadd.f32 %v953_v16, %v891_v15  ;;  %v821_v25 = vadd.f32 %v820_v14, %v629_v21  ;;  %v892_v26 = vmul.f32 %v629_v21, %v629_v21 }
 0x11b   : > { %v822_v29 = vadd.f32 %v1206_v9, %v821_v25  ;;  %v955_v30 = vadd.f32 %v954_v24, %v892_v26 }
 0x11d   : > { %v956_v33 = vadd.f32 %v955_v30, %v893_v28  ;;  %v1210_v34 = vpop.f32.mrb[24].mxu0  ;;  %v823_v35 = vadd.f32 %v1207_v18, %v822_v29  ;;  %v1471_v4 = vpop.f32.mrb[24].mxu1  ;;  %v903_v30 = vmul.f32 %v1425_v61, %v1425_v61 }
 0x11e   : > { %v642_v36 = vpop.f32.mrb[25].mxu0  ;;  %v897_v53 = vmul.f32 %v1210_v34, %v1210_v34  ;;  %v1473_v9 = vpop.f32.mrb[25].mxu1 }
 0x11f   : > { %v824_v40 = vadd.f32 %v823_v35, %v642_v36  ;;  %v895_v41 = vmul.f32 %v642_v36, %v642_v36  ;;  %v957_v42 = vadd.f32 %v956_v33, %v894_v31  ;;  %v1211_v44 = vpop.f32.mrb[26].mxu0  ;;  %v1475_v11 = vpop.f32.mrb[26].mxu1 }
 0x120   : > { %v645_v46 = vpop.f32.mrb[27].mxu0  ;;  %v898_v57 = vmul.f32 %v1211_v44, %v1211_v44  ;;  %v1477_v18 = vpop.f32.mrb[27].mxu1 }
 0x121   : > { %v958_v48 = vadd.f32 %v957_v42, %v895_v41  ;;  %v825_v49 = vadd.f32 %v824_v40, %v645_v46  ;;  %v896_v50 = vmul.f32 %v645_v46, %v645_v46  ;;  %v904_v42 = vmul.f32 %v1429_v3, %v1429_v3 }
 0x122   : > { %v905_v46 = vmul.f32 %v1423_v56, %v1423_v56 }
 0x123   : > { %v826_v54 = vadd.f32 %v1210_v34, %v825_v49  ;;  %v959_v55 = vadd.f32 %v958_v48, %v896_v50 }
 0x125   : > { %v960_v59 = vadd.f32 %v959_v55, %v897_v53  ;;  %v1214_v62 = vpop.f32.mrb[28].mxu0  ;;  %v827_v0 = vadd.f32 %v1211_v44, %v826_v54  ;;  %v1481_v31 = vpop.f32.mrb[28].mxu1  ;;  %v907_v54 = vmul.f32 %v1433_v17, %v1433_v17 }
 0x126   : > { %v658_v1 = vpop.f32.mrb[29].mxu0  ;;  %v901_v21 = vmul.f32 %v1214_v62, %v1214_v62  ;;  %v1484_v35 = vpop.f32.mrb[29].mxu1 }
 0x127   : > { %v828_v5 = vadd.f32 %v827_v0, %v658_v1  ;;  %v899_v6 = vmul.f32 %v658_v1, %v658_v1  ;;  %v961_v7 = vadd.f32 %v960_v59, %v898_v57  ;;  %v1215_v8 = vpop.f32.mrb[30].mxu0  ;;  %v1486_v36 = vpop.f32.mrb[30].mxu1 }
 0x128   : > { %v661_v10 = vpop.f32.mrb[31].mxu0  ;;  %v902_v26 = vmul.f32 %v1215_v8, %v1215_v8  ;;  %v1491_v44 = vpop.f32.mrb[31].mxu1 }
 0x129   : > { %v962_v14 = vadd.f32 %v961_v7, %v899_v6  ;;  %v829_v15 = vadd.f32 %v828_v5, %v661_v10  ;;  %v900_v16 = vmul.f32 %v661_v10, %v661_v10 }
 0x12b   : > { %v830_v24 = vadd.f32 %v1214_v62, %v829_v15  ;;  %v963_v25 = vadd.f32 %v962_v14, %v900_v16  ;;  %v908_v62 = vmul.f32 %v1437_v23, %v1437_v23  ;;  %v912_v14 = vmul.f32 %v1445_v43, %v1445_v43 }
 0x12d   : > { %v964_v28 = vadd.f32 %v963_v25, %v901_v21  ;;  %v831_v29 = vadd.f32 %v1215_v8, %v830_v24 }
 0x12f   : > { %v832_v33 = vadd.f32 %v831_v29, %v1425_v61  ;;  %v965_v34 = vadd.f32 %v964_v28, %v902_v26  ;;  %v906_v61 = vmul.f32 %v1427_v63, %v1427_v63  ;;  %v916_v29 = vmul.f32 %v1453_v2, %v1453_v2 }
 0x131   : > { %v966_v40 = vadd.f32 %v965_v34, %v903_v30  ;;  %v833_v41 = vadd.f32 %v832_v33, %v1429_v3 }
 0x133   : > { %v834_v48 = vadd.f32 %v1423_v56, %v833_v41  ;;  %v967_v49 = vadd.f32 %v966_v40, %v904_v42  ;;  %v909_v56 = vmul.f32 %v1431_v12, %v1431_v12 }
 0x135   : > { %v968_v50 = vadd.f32 %v967_v49, %v905_v46  ;;  %v835_v53 = vadd.f32 %v1427_v63, %v834_v48  ;;  %v910_v63 = vmul.f32 %v1435_v19, %v1435_v19  ;;  %v920_v48 = vmul.f32 %v1461_v27, %v1461_v27 }
 0x137   : > { %v836_v55 = vadd.f32 %v835_v53, %v1433_v17  ;;  %v969_v3 = vadd.f32 %v968_v50, %v906_v61  ;;  %v911_v17 = vmul.f32 %v1441_v37, %v1441_v37 }
 0x139   : > { %v970_v57 = vadd.f32 %v969_v3, %v907_v54  ;;  %v837_v59 = vadd.f32 %v836_v55, %v1437_v23 }
 0x13b   : > { %v838_v0 = vadd.f32 %v1431_v12, %v837_v59  ;;  %v971_v1 = vadd.f32 %v970_v57, %v908_v62  ;;  %v913_v12 = vmul.f32 %v1439_v32, %v1439_v32  ;;  %v924_v57 = vmul.f32 %v1469_v51, %v1469_v51 }
 0x13d   : > { %v972_v5 = vadd.f32 %v971_v1, %v909_v56  ;;  %v839_v6 = vadd.f32 %v1435_v19, %v838_v0  ;;  %v914_v19 = vmul.f32 %v1443_v39, %v1443_v39 }
 0x13f   : > { %v840_v7 = vadd.f32 %v839_v6, %v1441_v37  ;;  %v973_v8 = vadd.f32 %v972_v5, %v910_v63  ;;  %v915_v37 = vmul.f32 %v1449_v58, %v1449_v58  ;;  %v928_v6 = vmul.f32 %v1477_v18, %v1477_v18 }
 0x141   : > { %v974_v10 = vadd.f32 %v973_v8, %v911_v17  ;;  %v841_v23 = vadd.f32 %v840_v7, %v1445_v43 }
 0x143   : > { %v842_v15 = vadd.f32 %v1439_v32, %v841_v23  ;;  %v975_v16 = vadd.f32 %v974_v10, %v912_v14  ;;  %v917_v32 = vmul.f32 %v1447_v52, %v1447_v52  ;;  %v931_v10 = vmul.f32 %v1484_v35, %v1484_v35 }
 0x145   : > { %v976_v21 = vadd.f32 %v975_v16, %v913_v12  ;;  %v843_v24 = vadd.f32 %v1443_v39, %v842_v15  ;;  %v918_v39 = vmul.f32 %v1451_v60, %v1451_v60  ;;  %v933_v15 = vmul.f32 %v1481_v31, %v1481_v31 }
 0x147   : > { %v844_v25 = vadd.f32 %v843_v24, %v1449_v58  ;;  %v977_v26 = vadd.f32 %v976_v21, %v914_v19  ;;  %v919_v58 = vmul.f32 %v1457_v20, %v1457_v20 }
 0x149   : > { %v978_v28 = vadd.f32 %v977_v26, %v915_v37  ;;  %v845_v43 = vadd.f32 %v844_v25, %v1453_v2 }
 0x14b   : > { %v846_v30 = vadd.f32 %v1447_v52, %v845_v43  ;;  %v979_v33 = vadd.f32 %v978_v28, %v916_v29  ;;  %v921_v52 = vmul.f32 %v1455_v13, %v1455_v13 }
 0x14d   : > { %v980_v34 = vadd.f32 %v979_v33, %v917_v32  ;;  %v847_v40 = vadd.f32 %v1451_v60, %v846_v30  ;;  %v922_v60 = vmul.f32 %v1459_v22, %v1459_v22 }
 0x14f   : > { %v848_v41 = vadd.f32 %v847_v40, %v1457_v20  ;;  %v981_v42 = vadd.f32 %v980_v34, %v918_v39  ;;  %v923_v20 = vmul.f32 %v1465_v45, %v1465_v45 }
 0x151   : > { %v982_v46 = vadd.f32 %v981_v42, %v919_v58  ;;  %v849_v2 = vadd.f32 %v848_v41, %v1461_v27 }
 0x153   : > { %v850_v49 = vadd.f32 %v1455_v13, %v849_v2  ;;  %v983_v61 = vadd.f32 %v982_v46, %v920_v48  ;;  %v925_v13 = vmul.f32 %v1463_v38, %v1463_v38 }
 0x155   : > { %v984_v50 = vadd.f32 %v983_v61, %v921_v52  ;;  %v851_v53 = vadd.f32 %v1459_v22, %v850_v49  ;;  %v926_v22 = vmul.f32 %v1467_v47, %v1467_v47 }
 0x157   : > { %v852_v54 = vadd.f32 %v851_v53, %v1465_v45  ;;  %v985_v55 = vadd.f32 %v984_v50, %v922_v60  ;;  %v927_v45 = vmul.f32 %v1473_v9, %v1473_v9 }
 0x159   : > { %v986_v3 = vadd.f32 %v985_v55, %v923_v20  ;;  %v853_v27 = vadd.f32 %v852_v54, %v1469_v51 }
 0x15b   : > { %v854_v59 = vadd.f32 %v1463_v38, %v853_v27  ;;  %v987_v62 = vadd.f32 %v986_v3, %v924_v57  ;;  %v929_v38 = vmul.f32 %v1471_v4, %v1471_v4 }
 0x15d   : > { %v988_v56 = vadd.f32 %v987_v62, %v925_v13  ;;  %v855_v0 = vadd.f32 %v1467_v47, %v854_v59  ;;  %v930_v47 = vmul.f32 %v1475_v11, %v1475_v11 }
 0x15f   : > { %v856_v1 = vadd.f32 %v855_v0, %v1473_v9  ;;  %v989_v63 = vadd.f32 %v988_v56, %v926_v22 }
 0x161   : > { %v990_v5 = vadd.f32 %v989_v63, %v927_v45  ;;  %v857_v51 = vadd.f32 %v856_v1, %v1477_v18 }
 0x163   : > { %v858_v17 = vadd.f32 %v1471_v4, %v857_v51  ;;  %v991_v7 = vadd.f32 %v990_v5, %v928_v6  ;;  %v932_v4 = vmul.f32 %v1491_v44, %v1491_v44 }
 0x165   : > { %v992_v8 = vadd.f32 %v991_v7, %v929_v38  ;;  %v859_v9 = vadd.f32 %v1475_v11, %v858_v17  ;;  %v934_v11 = vmul.f32 %v1486_v36, %v1486_v36 }
 0x167   : > { %v860_v23 = vadd.f32 %v859_v9, %v1484_v35  ;;  %v993_v18 = vadd.f32 %v992_v8, %v930_v47 }
 0x169   : > { %v994_v14 = vadd.f32 %v993_v18, %v931_v10  ;;  %v861_v12 = vadd.f32 %v860_v23, %v1491_v44 }
 0x16b   : > { %v862_v16 = vadd.f32 %v1481_v31, %v861_v12  ;;  %v995_v19 = vadd.f32 %v994_v14, %v932_v4 }
 0x16d   : > { %v863_v21 = vadd.f32 %v1486_v36, %v862_v16  ;;  %v996_v35 = vadd.f32 %v995_v19, %v933_v15 }
 0x16f   : > { %v864_v24 = vrot.slane %v863_v21, 4  ;;  %v997_v37 = vadd.f32 %v996_v35, %v934_v11 }
 0x171   : > { %v865_v25 = vadd.f32 %v864_v24, %v863_v21  ;;  %v998_v26 = vrot.slane %v997_v37, 4 }
 0x173   : > { %v866_v28 = vrot.slane %v865_v25, 2  ;;  %v999_v44 = vadd.f32 %v998_v26, %v997_v37 }
 0x175   : > { %v867_v43 = vadd.f32 %v866_v28, %v865_v25  ;;  %v1000_v29 = vrot.slane %v999_v44, 2 }
 0x177   : > { %v868_v32 = vrot.slane %v867_v43, 1  ;;  %v1001_v31 = vadd.f32 %v1000_v29, %v999_v44 }
 0x179   : > { %v869_v30 = vadd.f32 %v868_v32, %v867_v43  ;;  %v1002_v33 = vrot.slane %v1001_v31, 1 }
 0x17b   : > { %870 = vst [vmem:[%s143_s29] sm:$0x1] %v869_v30  ;;  %v1003_v36 = vadd.f32 %v1002_v33, %v1001_v31 }
 0x17d   : > { %1004 = vst [vmem:[%s143_s29 + $0x1] sm:$0x1] %v1003_v36 }
 0x17e PF: > { %s12_s9 = sadd.s32 1, %s1310_s9  }
 0x17f   : > { %p9_p5 = scmp.ge.s32.totalorder %s12_s9, 4  }
 0x181   :  { %11 = sbr.rel (!%p9_p5) target bundleno = 1 (0x1), region = 58 }

// kernel: conv3d_block.3
= control target key start
LH: loop header
LB: loop body
LE: loop exit
PB: predicated region body
PF: predicated region fallthrough
CT: control target
= control target key end

     0   :  { %s2042_s15 = smov 0   ;;  %s2319_s0 = inlined_call_operand.vmem [shape: bf16[1024,75], index: 0, kind: input, shape index: {}]   ;;  %s2320_s1 = inlined_call_operand.vmem [shape: bf16[75,128], index: 1, kind: input, shape index: {}]   ;;  %s2321_s2 = inlined_call_operand.vmem [shape: f32[1,128], index: 2, kind: input, shape index: {}]   ;;  %s2322_s3 = inlined_call_operand.vmem [shape: f32[1,128], index: 3, kind: input, shape index: {}]   ;;  %s2323_s4 = inlined_call_operand.vmem [shape: bf16[1024,128], index: 4, kind: output, shape index: {}]  }
   0x1 LB: > { %s1440_s16 = sadd.s32 4294967295, %s2014_s15   ;;  %p1444_p0 = scmp.ge.s32.totalorder %s2014_s15, 1  ;;  %s2014_s15 = sphi %s2042_s15, %s14_s15  }
   0x2   : > { %p163_p1 = scmp.lt.s32.totalorder %s2014_s15, 3 }
   0x4   : > { %p164_p2 = pnand %p1444_p0, %p163_p1 }
   0x5   : > { %v1971_v0 = vld [vmem:[%s2320_s1] sm:$0xff] (!%p164_p2)   ;;  %v1972_v1 = vld [vmem:[%s2320_s1 + $0x8] sm:$0xff] (!%p164_p2)   ;;  %vm562_vm0 = vcmask (!%p164_p2), 1044480   ;;  %v1973_v2 = vld [vmem:[%s2320_s1 + $0x10] sm:$0xff] (!%p164_p2)   ;;  %s1445_s23 = sshll.u32 (!%p164_p2), %s1440_s16, 6  ;;  %vm563_vm1 = vcmask (!%p164_p2), 1045504  }
   0x6   : > { %167 = sbr.rel (%p164_p2) target bundleno = 307 (0x133), region = 36  ;;  %1878 = vmatprep.subr.bf16.mxu0 (!%p164_p2), %v1971_v0  ;;  %1952 = vmatprep.subr.bf16.mxu1 (!%p164_p2), %v1971_v0  ;;  %v2016_v3 = vmov (!%p164_p2), 65535   ;;  %p190_p3 = scmp.lt.s32.totalorder (!%p164_p2), %s1445_s23, 127  ;;  %v1974_v5 = vld [vmem:[%s2320_s1 + $0x18] sm:$0xff] (!%p164_p2)   ;;  %v1975_v6 = vld [vmem:[%s2320_s1 + $0x20] sm:$0x3f] (!%p164_p2)  }
   0x7   : > { %1879 = vmatpush3.bf16.msra.mxu0 (!%p164_p2), %v1971_v0  ;;  %1957 = vmatpush3.bf16.msra.mxu1 (!%p164_p2), %v1971_v0  ;;  %v564_v4 = vsel (!%p164_p2), %vm562_vm0, 4294967295, %v2016_v3  ;;  %vm465_vm2 = vcmask (!%p164_p2), 613376   ;;  %v2142_v41 = vld [vmem:[%s2321_s2] ss:$0 sm:$0xff] (!%p164_p2) }
   0x8   : > { %1880 = vmatprep.subr.bf16.mxu0 (!%p164_p2), %v1972_v1  ;;  %1953 = vmatprep.subr.bf16.mxu1 (!%p164_p2), %v1972_v1  ;;  %v565_v7 = vsel (!%p164_p2), %vm563_vm1, %v564_v4, 0  ;;  %v2147_v43 = vld [vmem:[%s2322_s3] ss:$0 sm:$0xff] (!%p164_p2) }
   0x9   : > { %v567_v8 = vand.u32 (!%p164_p2), %v1975_v6, %v565_v7 }
   0xb   : > { %1881 = vmatpush3.bf16.msra.mxu0 (!%p164_p2), %v1972_v1  ;;  %1958 = vmatpush3.bf16.msra.mxu1 (!%p164_p2), %v1972_v1 }
   0xc   : > { %1882 = vmatprep.subr.bf16.mxu0 (!%p164_p2), %v1973_v2  ;;  %1954 = vmatprep.subr.bf16.mxu1 (!%p164_p2), %v1973_v2 }
   0xd   : > { %s2325_s23 = smov (!%p190_p3, %s1445_s23), 127 }
   0xe   : > { %s1446_s28 = sshll.u32 %s2325_s23, 2 }
   0xf   : > { %1883 = vmatpush3.bf16.msra.mxu0 %v1973_v2  ;;  %1959 = vmatpush3.bf16.msra.mxu1 %v1973_v2  ;;  %s2073_s5 = scalar_lea.vmem %s2319_s0, %s1446_s28  ;;  %s2170_s12 = scalar_lea.vmem %s2323_s4, %s1446_s28 }
  0x10   : > { %1884 = vmatprep.subr.bf16.mxu0 %v1974_v5  ;;  %1955 = vmatprep.subr.bf16.mxu1 %v1974_v5  ;;  %v1976_v9 = vld [vmem:[%s2073_s5] sm:$0xff]   ;;  %v1978_v11 = vld [vmem:[%s2073_s5 + $0x8] sm:$0xff]   ;;  %v1980_v13 = vld [vmem:[%s2073_s5 + $0x10] sm:$0xff]  }
  0x11   : > { %v1977_v10 = vld [vmem:[%s2073_s5 + $0x80] sm:$0xff]   ;;  %1888 = vmatprep.mubr.msk.bf16.mxu0 %vm465_vm2, %v1976_v9  ;;  %v1979_v12 = vld [vmem:[%s2073_s5 + $0x88] sm:$0xff]   ;;  %v1981_v14 = vld [vmem:[%s2073_s5 + $0x90] sm:$0xff]  }
  0x12   : > { %1920 = vmatprep.mubr.msk.bf16.mxu1 %vm465_vm2, %v1977_v10  ;;  %v1982_v15 = vld [vmem:[%s2073_s5 + $0x18] sm:$0xff]   ;;  %v1984_v17 = vld [vmem:[%s2073_s5 + $0x20] sm:$0xff]   ;;  %v1986_v19 = vld [vmem:[%s2073_s5 + $0x28] sm:$0xff]  }
  0x13   : > { %1885 = vmatpush3.bf16.msra.mxu0 %v1974_v5  ;;  %1960 = vmatpush3.bf16.msra.mxu1 %v1974_v5  ;;  %v1983_v16 = vld [vmem:[%s2073_s5 + $0x98] sm:$0xff]   ;;  %v1985_v18 = vld [vmem:[%s2073_s5 + $0xa0] sm:$0xff]   ;;  %v1987_v20 = vld [vmem:[%s2073_s5 + $0xa8] sm:$0xff]  }
  0x14   : > { %1886 = vmatprep.subr.bf16.mxu0 %v567_v8  ;;  %1956 = vmatprep.subr.bf16.mxu1 %v567_v8  ;;  %v1988_v21 = vld [vmem:[%s2073_s5 + $0x30] sm:$0xff]   ;;  %v1990_v23 = vld [vmem:[%s2073_s5 + $0x38] sm:$0xff]   ;;  %v1992_v25 = vld [vmem:[%s2073_s5 + $0x40] sm:$0xff]  }
  0x15   : > { %v1989_v22 = vld [vmem:[%s2073_s5 + $0xb0] sm:$0xff]   ;;  %v1991_v24 = vld [vmem:[%s2073_s5 + $0xb8] sm:$0xff]   ;;  %v1993_v26 = vld [vmem:[%s2073_s5 + $0xc0] sm:$0xff]  }
  0x16   : > { %v1994_v27 = vld [vmem:[%s2073_s5 + $0x48] sm:$0xff]   ;;  %v1996_v29 = vld [vmem:[%s2073_s5 + $0x50] sm:$0xff]   ;;  %v1998_v31 = vld [vmem:[%s2073_s5 + $0x58] sm:$0xff]  }
  0x17   : > { %1887 = vmatpush3.bf16.msra.mxu0 %v567_v8  ;;  %1961 = vmatpush3.bf16.msra.mxu1 %v567_v8  ;;  %v1995_v28 = vld [vmem:[%s2073_s5 + $0xc8] sm:$0xff]   ;;  %v1997_v30 = vld [vmem:[%s2073_s5 + $0xd0] sm:$0xff]   ;;  %v1999_v32 = vld [vmem:[%s2073_s5 + $0xd8] sm:$0xff]  }
  0x18   : > { %v2000_v33 = vld [vmem:[%s2073_s5 + $0x60] sm:$0xff]   ;;  %v2002_v35 = vld [vmem:[%s2073_s5 + $0x68] sm:$0xff]   ;;  %v2004_v37 = vld [vmem:[%s2073_s5 + $0x70] sm:$0xff]  }
  0x19   : > { %v2001_v34 = vld [vmem:[%s2073_s5 + $0xe0] sm:$0xff]   ;;  %v2003_v36 = vld [vmem:[%s2073_s5 + $0xe8] sm:$0xff]   ;;  %v2005_v38 = vld [vmem:[%s2073_s5 + $0xf0] sm:$0xff]  }
  0x1a   : > { %1889 = vmatmul.mubr.msk.bf16.vlgmr.msra.gmra.mrb[0].mxu0 %vm465_vm2, %v1978_v11  ;;  %1921 = vmatmul.mubr.msk.bf16.vlgmr.msra.gmra.mrb[0].mxu1 %vm465_vm2, %v1979_v12  ;;  %v2006_v39 = vld [vmem:[%s2073_s5 + $0x78] sm:$0xff]  }
  0x1b   : > { %1892 = vmatprep.mubr.msk.bf16.mxu0 %vm465_vm2, %v1980_v13  ;;  %1924 = vmatprep.mubr.msk.bf16.mxu1 %vm465_vm2, %v1981_v14  ;;  %v2007_v40 = vld [vmem:[%s2073_s5 + $0xf8] sm:$0xff]  }
  0x22   : > { %1893 = vmatmul.mubr.msk.bf16.gmra.mrb[4].mxu0 %vm465_vm2, %v1982_v15  ;;  %1925 = vmatmul.mubr.msk.bf16.gmra.mrb[4].mxu1 %vm465_vm2, %v1983_v16 }
  0x23   : > { %1896 = vmatprep.mubr.msk.bf16.mxu0 %vm465_vm2, %v1984_v17  ;;  %1928 = vmatprep.mubr.msk.bf16.mxu1 %vm465_vm2, %v1985_v18 }
  0x2a   : > { %1897 = vmatmul.mubr.msk.bf16.gmra.mrb[8].mxu0 %vm465_vm2, %v1986_v19  ;;  %1929 = vmatmul.mubr.msk.bf16.gmra.mrb[8].mxu1 %vm465_vm2, %v1987_v20 }
  0x2b   : > { %1900 = vmatprep.mubr.msk.bf16.mxu0 %vm465_vm2, %v1988_v21  ;;  %1932 = vmatprep.mubr.msk.bf16.mxu1 %vm465_vm2, %v1989_v22 }
  0x32   : > { %1901 = vmatmul.mubr.msk.bf16.gmra.mrb[12].mxu0 %vm465_vm2, %v1990_v23  ;;  %1933 = vmatmul.mubr.msk.bf16.gmra.mrb[12].mxu1 %vm465_vm2, %v1991_v24 }
  0x33   : > { %1904 = vmatprep.mubr.msk.bf16.mxu0 %vm465_vm2, %v1992_v25  ;;  %1936 = vmatprep.mubr.msk.bf16.mxu1 %vm465_vm2, %v1993_v26 }
  0x3a   : > { %1905 = vmatmul.mubr.msk.bf16.gmra.mrb[16].mxu0 %vm465_vm2, %v1994_v27  ;;  %1937 = vmatmul.mubr.msk.bf16.gmra.mrb[16].mxu1 %vm465_vm2, %v1995_v28 }
  0x3b   : > { %1908 = vmatprep.mubr.msk.bf16.mxu0 %vm465_vm2, %v1996_v29  ;;  %1940 = vmatprep.mubr.msk.bf16.mxu1 %vm465_vm2, %v1997_v30 }
  0x42   : > { %1909 = vmatmul.mubr.msk.bf16.gmra.mrb[20].mxu0 %vm465_vm2, %v1998_v31  ;;  %1941 = vmatmul.mubr.msk.bf16.gmra.mrb[20].mxu1 %vm465_vm2, %v1999_v32 }
  0x43   : > { %1912 = vmatprep.mubr.msk.bf16.mxu0 %vm465_vm2, %v2000_v33  ;;  %1944 = vmatprep.mubr.msk.bf16.mxu1 %vm465_vm2, %v2001_v34 }
  0x4a   : > { %1913 = vmatmul.mubr.msk.bf16.gmra.mrb[24].mxu0 %vm465_vm2, %v2002_v35  ;;  %1945 = vmatmul.mubr.msk.bf16.gmra.mrb[24].mxu1 %vm465_vm2, %v2003_v36 }
  0x4b   : > { %1916 = vmatprep.mubr.msk.bf16.mxu0 %vm465_vm2, %v2004_v37  ;;  %1948 = vmatprep.mubr.msk.bf16.mxu1 %vm465_vm2, %v2005_v38 }
  0x52   : > { %1917 = vmatmul.mubr.msk.bf16.gmra.mrb[28].mxu0 %vm465_vm2, %v2006_v39  ;;  %1949 = vmatmul.mubr.msk.bf16.gmra.mrb[28].mxu1 %vm465_vm2, %v2007_v40 }
  0xed   : > { %v1890_v42 = vpop.f32.mrb[0].mxu0  ;;  %v1922_v44 = vpop.f32.mrb[0].mxu1 }
  0xee   : > { %v867_v45 = vmul.f32 %v1890_v42, %v2142_v41  ;;  %v899_v46 = vmul.f32 %v1922_v44, %v2142_v41  ;;  %v603_v47 = vpop.f32.mrb[1].mxu0  ;;  %v731_v48 = vpop.f32.mrb[1].mxu1 }
  0xef   : > { %v865_v49 = vmul.f32 %v2142_v41, %v603_v47  ;;  %v897_v50 = vmul.f32 %v2142_v41, %v731_v48  ;;  %v1891_v51 = vpop.f32.mrb[2].mxu0  ;;  %v1923_v52 = vpop.f32.mrb[2].mxu1 }
  0xf0   : > { %v938_v53 = vadd.f32 %v2147_v43, %v867_v45  ;;  %v970_v54 = vadd.f32 %v2147_v43, %v899_v46  ;;  %v868_v55 = vmul.f32 %v1891_v51, %v2142_v41  ;;  %v900_v56 = vmul.f32 %v1923_v52, %v2142_v41  ;;  %v606_v57 = vpop.f32.mrb[3].mxu0  ;;  %v734_v58 = vpop.f32.mrb[3].mxu1 }
  0xf1   : > { %v936_v59 = vadd.f32 %v2147_v43, %v865_v49  ;;  %v968_v60 = vadd.f32 %v2147_v43, %v897_v50  ;;  %v866_v61 = vmul.f32 %v2142_v41, %v606_v57  ;;  %v898_v62 = vmul.f32 %v2142_v41, %v734_v58 }
  0xf2   : > { %v939_v63 = vadd.f32 %v2147_v43, %v868_v55  ;;  %v971_v0 = vadd.f32 %v2147_v43, %v900_v56  ;;  %v1002_v3 = vmax.f32 %v938_v53, 0.0  ;;  %v1034_v4 = vmax.f32 %v970_v54, 0.0 }
  0xf3   : > { %v937_v1 = vadd.f32 %v2147_v43, %v866_v61  ;;  %v969_v2 = vadd.f32 %v2147_v43, %v898_v62  ;;  %v1000_v7 = vmax.f32 %v936_v59, 0.0  ;;  %v1032_v8 = vmax.f32 %v968_v60, 0.0 }
  0xf4   : > { %v1003_v5 = vmax.f32 %v939_v63, 0.0  ;;  %v1035_v6 = vmax.f32 %v971_v0, 0.0 }
  0xf5   : > { %v1001_v9 = vmax.f32 %v937_v1, 0.0  ;;  %v1033_v10 = vmax.f32 %v969_v2, 0.0  ;;  %v1894_v11 = vpop.f32.mrb[4].mxu0  ;;  %v1926_v12 = vpop.f32.mrb[4].mxu1 }
  0xf6   : > { %v1658_v13 = vpack.c.bf16 %v1003_v5, %v1002_v3  ;;  %v1738_v14 = vpack.c.bf16 %v1035_v6, %v1034_v4  ;;  %v871_v15 = vmul.f32 %v1894_v11, %v2142_v41  ;;  %v903_v16 = vmul.f32 %v1926_v12, %v2142_v41  ;;  %v619_v17 = vpop.f32.mrb[5].mxu0  ;;  %v747_v18 = vpop.f32.mrb[5].mxu1 }
  0xf7   : > { %v1653_v19 = vpack.c.bf16 %v1001_v9, %v1000_v7  ;;  %v1733_v20 = vpack.c.bf16 %v1033_v10, %v1032_v8  ;;  %v869_v21 = vmul.f32 %v2142_v41, %v619_v17  ;;  %v901_v22 = vmul.f32 %v2142_v41, %v747_v18  ;;  %v1895_v23 = vpop.f32.mrb[6].mxu0  ;;  %v1927_v24 = vpop.f32.mrb[6].mxu1 }
  0xf8   : > { %1810 = vst [vmem:[%s2170_s12 + $0x8] sm:$0xff] %v1658_v13   ;;  %1826 = vst [vmem:[%s2170_s12 + $0x88] sm:$0xff] %v1738_v14   ;;  %v942_v25 = vadd.f32 %v2147_v43, %v871_v15  ;;  %v974_v26 = vadd.f32 %v2147_v43, %v903_v16  ;;  %v872_v27 = vmul.f32 %v1895_v23, %v2142_v41  ;;  %v622_v29 = vpop.f32.mrb[7].mxu0  ;;  %v750_v30 = vpop.f32.mrb[7].mxu1 }
  0xf9   : > { %v904_v28 = vmul.f32 %v1927_v24, %v2142_v41  ;;  %1654 = vst [vmem:[%s2170_s12] sm:$0xff] %v1653_v19   ;;  %1825 = vst [vmem:[%s2170_s12 + $0x80] sm:$0xff] %v1733_v20   ;;  %v940_v31 = vadd.f32 %v2147_v43, %v869_v21  ;;  %v972_v32 = vadd.f32 %v2147_v43, %v901_v22 }
  0xfa   : > { %v870_v33 = vmul.f32 %v2142_v41, %v622_v29  ;;  %v902_v34 = vmul.f32 %v2142_v41, %v750_v30  ;;  %v943_v35 = vadd.f32 %v2147_v43, %v872_v27  ;;  %v1006_v39 = vmax.f32 %v942_v25, 0.0 }
  0xfb   : > { %v975_v36 = vadd.f32 %v2147_v43, %v904_v28  ;;  %v1038_v40 = vmax.f32 %v974_v26, 0.0  ;;  %v1004_v45 = vmax.f32 %v940_v31, 0.0  ;;  %v1036_v46 = vmax.f32 %v972_v32, 0.0 }
  0xfc   : > { %v941_v37 = vadd.f32 %v2147_v43, %v870_v33  ;;  %v973_v38 = vadd.f32 %v2147_v43, %v902_v34  ;;  %v1007_v42 = vmax.f32 %v943_v35, 0.0 }
  0xfd   : > { %v1039_v44 = vmax.f32 %v975_v36, 0.0  ;;  %v1898_v49 = vpop.f32.mrb[8].mxu0  ;;  %v1930_v50 = vpop.f32.mrb[8].mxu1 }
  0xfe   : > { %v1005_v47 = vmax.f32 %v941_v37, 0.0  ;;  %v1037_v48 = vmax.f32 %v973_v38, 0.0  ;;  %v1668_v51 = vpack.c.bf16 %v1007_v42, %v1006_v39  ;;  %v875_v53 = vmul.f32 %v1898_v49, %v2142_v41  ;;  %v635_v55 = vpop.f32.mrb[9].mxu0  ;;  %v763_v56 = vpop.f32.mrb[9].mxu1 }
  0xff   : > { %v1748_v52 = vpack.c.bf16 %v1039_v44, %v1038_v40  ;;  %v907_v54 = vmul.f32 %v1930_v50, %v2142_v41  ;;  %v873_v59 = vmul.f32 %v2142_v41, %v635_v55  ;;  %v905_v60 = vmul.f32 %v2142_v41, %v763_v56  ;;  %v1899_v61 = vpop.f32.mrb[10].mxu0  ;;  %v1931_v62 = vpop.f32.mrb[10].mxu1 }
 0x100   : > { %v1663_v57 = vpack.c.bf16 %v1005_v47, %v1004_v45  ;;  %v1743_v58 = vpack.c.bf16 %v1037_v48, %v1036_v46  ;;  %1812 = vst [vmem:[%s2170_s12 + $0x18] sm:$0xff] %v1668_v51   ;;  %v946_v63 = vadd.f32 %v2147_v43, %v875_v53  ;;  %v876_v1 = vmul.f32 %v1899_v61, %v2142_v41  ;;  %v638_v3 = vpop.f32.mrb[11].mxu0  ;;  %v766_v4 = vpop.f32.mrb[11].mxu1 }
 0x101   : > { %1828 = vst [vmem:[%s2170_s12 + $0x98] sm:$0xff] %v1748_v52   ;;  %v978_v0 = vadd.f32 %v2147_v43, %v907_v54  ;;  %v908_v2 = vmul.f32 %v1931_v62, %v2142_v41  ;;  %v944_v5 = vadd.f32 %v2147_v43, %v873_v59  ;;  %v976_v6 = vadd.f32 %v2147_v43, %v905_v60 }
 0x102   : > { %1811 = vst [vmem:[%s2170_s12 + $0x10] sm:$0xff] %v1663_v57   ;;  %1827 = vst [vmem:[%s2170_s12 + $0x90] sm:$0xff] %v1743_v58   ;;  %v874_v7 = vmul.f32 %v2142_v41, %v638_v3  ;;  %v906_v8 = vmul.f32 %v2142_v41, %v766_v4  ;;  %v947_v9 = vadd.f32 %v2147_v43, %v876_v1  ;;  %v1010_v13 = vmax.f32 %v946_v63, 0.0 }
 0x103   : > { %v979_v10 = vadd.f32 %v2147_v43, %v908_v2  ;;  %v1042_v14 = vmax.f32 %v978_v0, 0.0  ;;  %v1008_v17 = vmax.f32 %v944_v5, 0.0  ;;  %v1040_v18 = vmax.f32 %v976_v6, 0.0 }
 0x104   : > { %v945_v11 = vadd.f32 %v2147_v43, %v874_v7  ;;  %v977_v12 = vadd.f32 %v2147_v43, %v906_v8  ;;  %v1011_v15 = vmax.f32 %v947_v9, 0.0 }
 0x105   : > { %v1043_v16 = vmax.f32 %v979_v10, 0.0  ;;  %v1902_v21 = vpop.f32.mrb[12].mxu0  ;;  %v1934_v22 = vpop.f32.mrb[12].mxu1 }
 0x106   : > { %v1009_v19 = vmax.f32 %v945_v11, 0.0  ;;  %v1041_v20 = vmax.f32 %v977_v12, 0.0  ;;  %v1678_v23 = vpack.c.bf16 %v1011_v15, %v1010_v13  ;;  %v879_v25 = vmul.f32 %v1902_v21, %v2142_v41  ;;  %v651_v27 = vpop.f32.mrb[13].mxu0  ;;  %v779_v28 = vpop.f32.mrb[13].mxu1 }
 0x107   : > { %v1758_v24 = vpack.c.bf16 %v1043_v16, %v1042_v14  ;;  %v911_v26 = vmul.f32 %v1934_v22, %v2142_v41  ;;  %v877_v31 = vmul.f32 %v2142_v41, %v651_v27  ;;  %v909_v32 = vmul.f32 %v2142_v41, %v779_v28  ;;  %v1903_v33 = vpop.f32.mrb[14].mxu0  ;;  %v1935_v34 = vpop.f32.mrb[14].mxu1 }
 0x108   : > { %v1673_v29 = vpack.c.bf16 %v1009_v19, %v1008_v17  ;;  %v1753_v30 = vpack.c.bf16 %v1041_v20, %v1040_v18  ;;  %1814 = vst [vmem:[%s2170_s12 + $0x28] sm:$0xff] %v1678_v23   ;;  %v950_v35 = vadd.f32 %v2147_v43, %v879_v25  ;;  %v880_v37 = vmul.f32 %v1903_v33, %v2142_v41  ;;  %v654_v39 = vpop.f32.mrb[15].mxu0  ;;  %v782_v40 = vpop.f32.mrb[15].mxu1 }
 0x109   : > { %1830 = vst [vmem:[%s2170_s12 + $0xa8] sm:$0xff] %v1758_v24   ;;  %v982_v36 = vadd.f32 %v2147_v43, %v911_v26  ;;  %v912_v38 = vmul.f32 %v1935_v34, %v2142_v41  ;;  %v948_v42 = vadd.f32 %v2147_v43, %v877_v31  ;;  %v980_v44 = vadd.f32 %v2147_v43, %v909_v32 }
 0x10a   : > { %1813 = vst [vmem:[%s2170_s12 + $0x20] sm:$0xff] %v1673_v29   ;;  %1829 = vst [vmem:[%s2170_s12 + $0xa0] sm:$0xff] %v1753_v30   ;;  %v878_v45 = vmul.f32 %v2142_v41, %v654_v39  ;;  %v910_v46 = vmul.f32 %v2142_v41, %v782_v40  ;;  %v951_v47 = vadd.f32 %v2147_v43, %v880_v37  ;;  %v1014_v51 = vmax.f32 %v950_v35, 0.0 }
 0x10b   : > { %v983_v48 = vadd.f32 %v2147_v43, %v912_v38  ;;  %v1046_v52 = vmax.f32 %v982_v36, 0.0  ;;  %v1012_v55 = vmax.f32 %v948_v42, 0.0  ;;  %v1044_v56 = vmax.f32 %v980_v44, 0.0 }
 0x10c   : > { %v949_v49 = vadd.f32 %v2147_v43, %v878_v45  ;;  %v981_v50 = vadd.f32 %v2147_v43, %v910_v46  ;;  %v1015_v53 = vmax.f32 %v951_v47, 0.0 }
 0x10d   : > { %v1047_v54 = vmax.f32 %v983_v48, 0.0  ;;  %v1906_v59 = vpop.f32.mrb[16].mxu0  ;;  %v1938_v60 = vpop.f32.mrb[16].mxu1 }
 0x10e   : > { %v1013_v57 = vmax.f32 %v949_v49, 0.0  ;;  %v1045_v58 = vmax.f32 %v981_v50, 0.0  ;;  %v1688_v61 = vpack.c.bf16 %v1015_v53, %v1014_v51  ;;  %v883_v63 = vmul.f32 %v1906_v59, %v2142_v41  ;;  %v667_v1 = vpop.f32.mrb[17].mxu0  ;;  %v795_v2 = vpop.f32.mrb[17].mxu1 }
 0x10f   : > { %v1768_v62 = vpack.c.bf16 %v1047_v54, %v1046_v52  ;;  %v915_v0 = vmul.f32 %v1938_v60, %v2142_v41  ;;  %v881_v5 = vmul.f32 %v2142_v41, %v667_v1  ;;  %v913_v6 = vmul.f32 %v2142_v41, %v795_v2  ;;  %v1907_v7 = vpop.f32.mrb[18].mxu0  ;;  %v1939_v8 = vpop.f32.mrb[18].mxu1 }
 0x110   : > { %v1683_v3 = vpack.c.bf16 %v1013_v57, %v1012_v55  ;;  %v1763_v4 = vpack.c.bf16 %v1045_v58, %v1044_v56  ;;  %1816 = vst [vmem:[%s2170_s12 + $0x38] sm:$0xff] %v1688_v61   ;;  %v954_v9 = vadd.f32 %v2147_v43, %v883_v63  ;;  %v884_v11 = vmul.f32 %v1907_v7, %v2142_v41  ;;  %v670_v13 = vpop.f32.mrb[19].mxu0  ;;  %v798_v14 = vpop.f32.mrb[19].mxu1 }
 0x111   : > { %1832 = vst [vmem:[%s2170_s12 + $0xb8] sm:$0xff] %v1768_v62   ;;  %v986_v10 = vadd.f32 %v2147_v43, %v915_v0  ;;  %v916_v12 = vmul.f32 %v1939_v8, %v2142_v41  ;;  %v952_v15 = vadd.f32 %v2147_v43, %v881_v5  ;;  %v984_v16 = vadd.f32 %v2147_v43, %v913_v6 }
 0x112   : > { %1815 = vst [vmem:[%s2170_s12 + $0x30] sm:$0xff] %v1683_v3   ;;  %1831 = vst [vmem:[%s2170_s12 + $0xb0] sm:$0xff] %v1763_v4   ;;  %v882_v17 = vmul.f32 %v2142_v41, %v670_v13  ;;  %v914_v18 = vmul.f32 %v2142_v41, %v798_v14  ;;  %v955_v19 = vadd.f32 %v2147_v43, %v884_v11  ;;  %v1018_v23 = vmax.f32 %v954_v9, 0.0 }
 0x113   : > { %v987_v20 = vadd.f32 %v2147_v43, %v916_v12  ;;  %v1050_v24 = vmax.f32 %v986_v10, 0.0  ;;  %v1016_v27 = vmax.f32 %v952_v15, 0.0  ;;  %v1048_v28 = vmax.f32 %v984_v16, 0.0 }
 0x114   : > { %v953_v21 = vadd.f32 %v2147_v43, %v882_v17  ;;  %v985_v22 = vadd.f32 %v2147_v43, %v914_v18  ;;  %v1019_v25 = vmax.f32 %v955_v19, 0.0 }
 0x115   : > { %v1051_v26 = vmax.f32 %v987_v20, 0.0  ;;  %v1910_v31 = vpop.f32.mrb[20].mxu0  ;;  %v1942_v32 = vpop.f32.mrb[20].mxu1 }
 0x116   : > { %v1017_v29 = vmax.f32 %v953_v21, 0.0  ;;  %v1049_v30 = vmax.f32 %v985_v22, 0.0  ;;  %v1698_v33 = vpack.c.bf16 %v1019_v25, %v1018_v23  ;;  %v887_v35 = vmul.f32 %v1910_v31, %v2142_v41  ;;  %v683_v37 = vpop.f32.mrb[21].mxu0  ;;  %v811_v38 = vpop.f32.mrb[21].mxu1 }
 0x117   : > { %v1778_v34 = vpack.c.bf16 %v1051_v26, %v1050_v24  ;;  %v919_v36 = vmul.f32 %v1942_v32, %v2142_v41  ;;  %v885_v42 = vmul.f32 %v2142_v41, %v683_v37  ;;  %v917_v44 = vmul.f32 %v2142_v41, %v811_v38  ;;  %v1911_v45 = vpop.f32.mrb[22].mxu0  ;;  %v1943_v46 = vpop.f32.mrb[22].mxu1 }
 0x118   : > { %v1693_v39 = vpack.c.bf16 %v1017_v29, %v1016_v27  ;;  %v1773_v40 = vpack.c.bf16 %v1049_v30, %v1048_v28  ;;  %1818 = vst [vmem:[%s2170_s12 + $0x48] sm:$0xff] %v1698_v33   ;;  %v958_v47 = vadd.f32 %v2147_v43, %v887_v35  ;;  %v888_v49 = vmul.f32 %v1911_v45, %v2142_v41  ;;  %v686_v51 = vpop.f32.mrb[23].mxu0  ;;  %v814_v52 = vpop.f32.mrb[23].mxu1 }
 0x119   : > { %1834 = vst [vmem:[%s2170_s12 + $0xc8] sm:$0xff] %v1778_v34   ;;  %v990_v48 = vadd.f32 %v2147_v43, %v919_v36  ;;  %v920_v50 = vmul.f32 %v1943_v46, %v2142_v41  ;;  %v956_v53 = vadd.f32 %v2147_v43, %v885_v42  ;;  %v988_v54 = vadd.f32 %v2147_v43, %v917_v44 }
 0x11a   : > { %1817 = vst [vmem:[%s2170_s12 + $0x40] sm:$0xff] %v1693_v39   ;;  %1833 = vst [vmem:[%s2170_s12 + $0xc0] sm:$0xff] %v1773_v40   ;;  %v886_v55 = vmul.f32 %v2142_v41, %v686_v51  ;;  %v918_v56 = vmul.f32 %v2142_v41, %v814_v52  ;;  %v959_v57 = vadd.f32 %v2147_v43, %v888_v49  ;;  %v1022_v61 = vmax.f32 %v958_v47, 0.0 }
 0x11b   : > { %v991_v58 = vadd.f32 %v2147_v43, %v920_v50  ;;  %v1054_v62 = vmax.f32 %v990_v48, 0.0  ;;  %v1020_v1 = vmax.f32 %v956_v53, 0.0  ;;  %v1052_v2 = vmax.f32 %v988_v54, 0.0 }
 0x11c   : > { %v957_v59 = vadd.f32 %v2147_v43, %v886_v55  ;;  %v989_v60 = vadd.f32 %v2147_v43, %v918_v56  ;;  %v1023_v63 = vmax.f32 %v959_v57, 0.0 }
 0x11d   : > { %v1055_v0 = vmax.f32 %v991_v58, 0.0  ;;  %v1914_v5 = vpop.f32.mrb[24].mxu0  ;;  %v1946_v6 = vpop.f32.mrb[24].mxu1 }
 0x11e   : > { %v1021_v3 = vmax.f32 %v957_v59, 0.0  ;;  %v1053_v4 = vmax.f32 %v989_v60, 0.0  ;;  %v1708_v7 = vpack.c.bf16 %v1023_v63, %v1022_v61  ;;  %v891_v9 = vmul.f32 %v1914_v5, %v2142_v41  ;;  %v699_v11 = vpop.f32.mrb[25].mxu0  ;;  %v827_v12 = vpop.f32.mrb[25].mxu1 }
 0x11f   : > { %v1788_v8 = vpack.c.bf16 %v1055_v0, %v1054_v62  ;;  %v923_v10 = vmul.f32 %v1946_v6, %v2142_v41  ;;  %v889_v15 = vmul.f32 %v2142_v41, %v699_v11  ;;  %v921_v16 = vmul.f32 %v2142_v41, %v827_v12  ;;  %v1915_v17 = vpop.f32.mrb[26].mxu0  ;;  %v1947_v18 = vpop.f32.mrb[26].mxu1 }
 0x120   : > { %v1703_v13 = vpack.c.bf16 %v1021_v3, %v1020_v1  ;;  %v1783_v14 = vpack.c.bf16 %v1053_v4, %v1052_v2  ;;  %1820 = vst [vmem:[%s2170_s12 + $0x58] sm:$0xff] %v1708_v7   ;;  %v962_v19 = vadd.f32 %v2147_v43, %v891_v9  ;;  %v892_v21 = vmul.f32 %v1915_v17, %v2142_v41  ;;  %v702_v23 = vpop.f32.mrb[27].mxu0  ;;  %v830_v24 = vpop.f32.mrb[27].mxu1 }
 0x121   : > { %1836 = vst [vmem:[%s2170_s12 + $0xd8] sm:$0xff] %v1788_v8   ;;  %v994_v20 = vadd.f32 %v2147_v43, %v923_v10  ;;  %v924_v22 = vmul.f32 %v1947_v18, %v2142_v41  ;;  %v960_v25 = vadd.f32 %v2147_v43, %v889_v15  ;;  %v992_v26 = vadd.f32 %v2147_v43, %v921_v16 }
 0x122   : > { %1819 = vst [vmem:[%s2170_s12 + $0x50] sm:$0xff] %v1703_v13   ;;  %1835 = vst [vmem:[%s2170_s12 + $0xd0] sm:$0xff] %v1783_v14   ;;  %v890_v27 = vmul.f32 %v2142_v41, %v702_v23  ;;  %v922_v28 = vmul.f32 %v2142_v41, %v830_v24  ;;  %v963_v29 = vadd.f32 %v2147_v43, %v892_v21  ;;  %v1026_v33 = vmax.f32 %v962_v19, 0.0 }
 0x123   : > { %v995_v30 = vadd.f32 %v2147_v43, %v924_v22  ;;  %v1058_v34 = vmax.f32 %v994_v20, 0.0  ;;  %v1024_v37 = vmax.f32 %v960_v25, 0.0  ;;  %v1056_v38 = vmax.f32 %v992_v26, 0.0 }
 0x124   : > { %v961_v31 = vadd.f32 %v2147_v43, %v890_v27  ;;  %v993_v32 = vadd.f32 %v2147_v43, %v922_v28  ;;  %v1027_v35 = vmax.f32 %v963_v29, 0.0 }
 0x125   : > { %v1059_v36 = vmax.f32 %v995_v30, 0.0  ;;  %v1918_v42 = vpop.f32.mrb[28].mxu0  ;;  %v1950_v44 = vpop.f32.mrb[28].mxu1 }
 0x126   : > { %v1025_v39 = vmax.f32 %v961_v31, 0.0  ;;  %v1057_v40 = vmax.f32 %v993_v32, 0.0  ;;  %v1718_v45 = vpack.c.bf16 %v1027_v35, %v1026_v33  ;;  %v895_v47 = vmul.f32 %v1918_v42, %v2142_v41  ;;  %v715_v49 = vpop.f32.mrb[29].mxu0  ;;  %v843_v50 = vpop.f32.mrb[29].mxu1 }
 0x127   : > { %v1798_v46 = vpack.c.bf16 %v1059_v36, %v1058_v34  ;;  %v927_v48 = vmul.f32 %v1950_v44, %v2142_v41  ;;  %v893_v53 = vmul.f32 %v2142_v41, %v715_v49  ;;  %v925_v54 = vmul.f32 %v2142_v41, %v843_v50  ;;  %v1919_v55 = vpop.f32.mrb[30].mxu0  ;;  %v1951_v56 = vpop.f32.mrb[30].mxu1 }
 0x128   : > { %v1713_v51 = vpack.c.bf16 %v1025_v39, %v1024_v37  ;;  %v1793_v52 = vpack.c.bf16 %v1057_v40, %v1056_v38  ;;  %1822 = vst [vmem:[%s2170_s12 + $0x68] sm:$0xff] %v1718_v45   ;;  %v966_v57 = vadd.f32 %v2147_v43, %v895_v47  ;;  %v896_v59 = vmul.f32 %v1919_v55, %v2142_v41  ;;  %v718_v61 = vpop.f32.mrb[31].mxu0  ;;  %v846_v62 = vpop.f32.mrb[31].mxu1 }
 0x129   : > { %1838 = vst [vmem:[%s2170_s12 + $0xe8] sm:$0xff] %v1798_v46   ;;  %v998_v58 = vadd.f32 %v2147_v43, %v927_v48  ;;  %v928_v60 = vmul.f32 %v1951_v56, %v2142_v41  ;;  %v964_v63 = vadd.f32 %v2147_v43, %v893_v53  ;;  %v996_v0 = vadd.f32 %v2147_v43, %v925_v54 }
 0x12a   : > { %1821 = vst [vmem:[%s2170_s12 + $0x60] sm:$0xff] %v1713_v51   ;;  %1837 = vst [vmem:[%s2170_s12 + $0xe0] sm:$0xff] %v1793_v52   ;;  %v894_v1 = vmul.f32 %v2142_v41, %v718_v61  ;;  %v926_v2 = vmul.f32 %v2142_v41, %v846_v62  ;;  %v967_v3 = vadd.f32 %v2147_v43, %v896_v59  ;;  %v1030_v7 = vmax.f32 %v966_v57, 0.0 }
 0x12b   : > { %v999_v4 = vadd.f32 %v2147_v43, %v928_v60  ;;  %v1062_v8 = vmax.f32 %v998_v58, 0.0  ;;  %v1028_v11 = vmax.f32 %v964_v63, 0.0  ;;  %v1060_v12 = vmax.f32 %v996_v0, 0.0 }
 0x12c   : > { %v965_v5 = vadd.f32 %v2147_v43, %v894_v1  ;;  %v997_v6 = vadd.f32 %v2147_v43, %v926_v2  ;;  %v1031_v9 = vmax.f32 %v967_v3, 0.0 }
 0x12d   : > { %v1063_v10 = vmax.f32 %v999_v4, 0.0 }
 0x12e   : > { %v1029_v13 = vmax.f32 %v965_v5, 0.0  ;;  %v1061_v41 = vmax.f32 %v997_v6, 0.0  ;;  %v1728_v14 = vpack.c.bf16 %v1031_v9, %v1030_v7 }
 0x12f   : > { %v1808_v15 = vpack.c.bf16 %v1063_v10, %v1062_v8 }
 0x130   : > { %v1723_v16 = vpack.c.bf16 %v1029_v13, %v1028_v11  ;;  %v1803_v17 = vpack.c.bf16 %v1061_v41, %v1060_v12  ;;  %1824 = vst [vmem:[%s2170_s12 + $0x78] sm:$0xff] %v1728_v14  }
 0x131   : > { %1840 = vst [vmem:[%s2170_s12 + $0xf8] sm:$0xff] %v1808_v15  }
 0x132   : > { %1823 = vst [vmem:[%s2170_s12 + $0x70] sm:$0xff] %v1723_v16   ;;  %1839 = vst [vmem:[%s2170_s12 + $0xf0] sm:$0xff] %v1803_v17  }
 0x133 PF: > { %s14_s15 = sadd.s32 1, %s2014_s15  }
 0x134   : > { %p11_p4 = scmp.ge.s32.totalorder %s14_s15, 4  }
 0x136   :  { %13 = sbr.rel (!%p11_p4) target bundleno = 1 (0x1), region = 66 }

</bundles_post_ra>
